<compile_context>
chip_gen: v7x
topology: tpu7x:2x2x1
jax: 0.10.0
libtpu: 0.0.40
codegen_flags: <defaults>
</compile_context>

<pallas_src>
import jax
import jax.numpy as jnp
from jax.experimental import pallas as pl
from jax.experimental.pallas import tpu as pltpu


def _swish_kernel(x_ref, o_ref):
    xf = x_ref[...].astype(jnp.float32)
    # Exact sigmoid: numerically safe in f32 (exp(-x) saturates cleanly).
    sig = 1.0 / (1.0 + jnp.exp(-xf))
    o_ref[...] = (xf * sig).astype(o_ref.dtype)


_LANE_CANDIDATES = (8192, 4096, 2048, 1024, 512, 256, 128)
_MIN_GRID_STEPS = 8          # enough steps for pipeline overlap + v7x 2-TC split
_MIN_BLOCK_BYTES = 1 << 20   # ~1 MiB floor: stay off the small-tile cliff


def _choose_tiling(n: int, itemsize: int, target_block_bytes: int):
    """Pick (lane, rows, row_tile, pad_elems) for a flat array of n elements."""
    sublane = 8 * max(1, 4 // itemsize)   # 8 for f32, 16 for bf16, 32 for i8/fp8

    # Lane-dense width: largest multiple of 128 (<= 8192) dividing n; else pad.
    lane = None
    for cand in _LANE_CANDIDATES:
        if n % cand == 0:
            lane = cand
            break
    pad = 0
    if lane is None:
        lane = 1024
        pad = (-n) % lane
    rows = (n + pad) // lane

    if rows <= sublane:
        # Tiny array: a single full-extent block (block dim == array dim is valid).
        return lane, rows, rows, pad

    row_bytes = lane * itemsize

    def _down(v):  # round down to sublane multiple, at least one sublane
        return max(sublane, (v // sublane) * sublane)

    def _up(v):    # round up to sublane multiple
        return -(-v // sublane) * sublane

    rt_cap = _down(target_block_bytes // row_bytes)      # VMEM byte budget
    rt_floor = _down(_MIN_BLOCK_BYTES // row_bytes)      # keep blocks >= ~1 MiB
    rt_steps = _up(pl.cdiv(rows, _MIN_GRID_STEPS))       # aim for >= ~8 grid steps

    row_tile = min(rt_cap, max(rt_floor, rt_steps))
    row_tile = min(row_tile, _down(rows))                # never exceed the array
    return lane, rows, row_tile, pad


def swish(x: jax.Array, *, target_block_bytes: int = 8 * 1024 * 1024) -> jax.Array:
    """Elementwise swish (x * sigmoid(x)) via a Pallas TPU kernel, any shape."""
    orig_shape = x.shape
    orig_dtype = x.dtype
    n = x.size
    itemsize = jnp.dtype(orig_dtype).itemsize

    lane, rows, row_tile, pad = _choose_tiling(n, itemsize, target_block_bytes)

    # TODO(synk): when this flatten is not layout-bitcast-compatible the reshape
    # costs an extra relayout pass; blocking the native N-D shape would avoid it.
    flat = x.reshape(-1)
    if pad:
        flat = jnp.pad(flat, (0, pad))   # zeros are harmless: swish(0) == 0
    x2d = flat.reshape(rows, lane)

    block_bytes = row_tile * lane * itemsize
    # 2 arrays (in + out) x 2 pipeline buffers x block, plus scratch headroom.
    vmem_limit = max(16 * 1024 * 1024, 2 * 2 * block_bytes + 4 * 1024 * 1024)

    grid = (pl.cdiv(rows, row_tile),)   # ragged trailing block: OOB writes dropped
    out2d = pl.pallas_call(
        _swish_kernel,
        out_shape=jax.ShapeDtypeStruct((rows, lane), orig_dtype),
        grid_spec=pltpu.PrefetchScalarGridSpec(
            num_scalar_prefetch=0,
            grid=grid,
            in_specs=[pl.BlockSpec((row_tile, lane), lambda i: (i, 0))],
            out_specs=pl.BlockSpec((row_tile, lane), lambda i: (i, 0)),
        ),
        compiler_params=pltpu.CompilerParams(
            dimension_semantics=("parallel",),
            vmem_limit_bytes=vmem_limit,
        ),
    )(x2d)

    out_flat = out2d.reshape(-1)
    if pad:
        out_flat = out_flat[:n]
    return out_flat.reshape(orig_shape)


if __name__ == "__main__":
    key = jax.random.PRNGKey(0)
    x = jax.random.normal(key, (2, 4, 16, 16), dtype=jnp.float32)

    y = swish(x)
    jax.block_until_ready(y)

    # Reference check against plain JAX swish (exact sigmoid in-kernel).
    y_ref = x * jax.nn.sigmoid(x)
    assert y.shape == x.shape and y.dtype == x.dtype
    assert jnp.allclose(y, y_ref, atol=1e-5, rtol=1e-5)

    print("KERNEL_OK")
</pallas_src>

<mosaic_0001>
module attributes {stable_mosaic.version = 11 : i64} {
  func.func @_swish_kernel(%arg0: i32, %arg1: memref<1x2048xf32, #tpu.memory_space<vmem>>, %arg2: memref<1x2048xf32, #tpu.memory_space<vmem>>) attributes {dimension_semantics = [#tpu.dimension_semantics<parallel>], iteration_bounds = array<i64: 1>, scalar_prefetch = 0 : i64, scratch_operands = 0 : i64, tpu.core_type = #tpu.core_type<tc>, window_params = [{transform_indices = @transform_0, window_bounds = array<i64: 1, 2048>}, {transform_indices = @transform_1, window_bounds = array<i64: 1, 2048>}]} {
    %c0 = arith.constant 0 : index
    %c0_0 = arith.constant 0 : index
    %0 = vector.load %arg1[%c0, %c0_0] : memref<1x2048xf32, #tpu.memory_space<vmem>>, vector<1x2048xf32>
    %cst = arith.constant 0.000000e+00 : f32
    %1 = vector.broadcast %cst : f32 to vector<1x2048xf32>
    %2 = arith.subf %1, %0 : vector<1x2048xf32>
    %3 = math.exp %2 : vector<1x2048xf32>
    %cst_1 = arith.constant 1.000000e+00 : f32
    %4 = vector.broadcast %cst_1 : f32 to vector<1x2048xf32>
    %5 = arith.addf %4, %3 : vector<1x2048xf32>
    %cst_2 = arith.constant 1.000000e+00 : f32
    %6 = vector.broadcast %cst_2 : f32 to vector<1x2048xf32>
    %7 = arith.divf %6, %5 : vector<1x2048xf32>
    %8 = arith.mulf %0, %7 : vector<1x2048xf32>
    %c0_3 = arith.constant 0 : index
    %c0_4 = arith.constant 0 : index
    %9 = vector.load %arg2[%c0_3, %c0_4] : memref<1x2048xf32, #tpu.memory_space<vmem>>, vector<1x2048xf32>
    tpu.vector_store %arg2[%c0_3, %c0_4], %8 {strides = array<i32>} : memref<1x2048xf32, #tpu.memory_space<vmem>>, vector<1x2048xf32>,
    return
  }
  func.func @transform_0(%arg0: i32) -> (i32, i32) {
    %c0_i32 = arith.constant 0 : i32
    %c0_i32_0 = arith.constant 0 : i32
    return %arg0, %c0_i32 : i32, i32
  }
  func.func @transform_1(%arg0: i32) -> (i32, i32) {
    %c0_i32 = arith.constant 0 : i32
    %c0_i32_0 = arith.constant 0 : i32
    return %arg0, %c0_i32 : i32, i32
  }
}

</mosaic_0001>

<bundles_post_ra>
// kernel: tpu_custom_call.1
= control target key start
LH: loop header
LB: loop body
LE: loop exit
PB: predicated region body
PF: predicated region fallthrough
CT: control target
= control target key end

     0   :  { %6 = vsyncpa [#allocation3], 0  ;;  %s148_s0 = inlined_call_operand.hbm [shape: f32[1,2048], index: 0, kind: input, shape index: {}]   ;;  %s149_s1 = inlined_call_operand.hbm [shape: f32[1,2048], index: 1, kind: output, shape index: {}]  }
   0x1   :  { %7 = vsyncpa [#allocation4], 0  ;;  %s112_s6 = smov [#allocation2]   ;;  %s64_s10 = scalar_lea.hbm %s148_s0, 256 }
   0x2   :  { %s14_s7 = sshll.u32 %s112_s6, 4  ;;  %p65_p0 = scmp.ne.s32.totalorder %s148_s0, %s64_s10  ;;  %s15_s7 = int_to_ptr.vmem [resolvable:$true] %s14_s7 }
   0x3   :  { %p68_p1 = scmp.lt.u32.totalorder %s64_s10, %s148_s0 }
   0x5   :  { %p70_p2 = pnand %p68_p1, %p65_p0 }
   0x7   :  { %73 = shalt.err (!%p70_p2)
}
   0x8   :  { %s74_s15 = scalar_lea.vmem %s15_s7, 256  ;;  %p79_p4 = scmp.lt.s32.totalorder %s15_s7, %s15_s7 }
   0x9   :  { %p75_p3 = scmp.ne.s32.totalorder %s15_s7, %s74_s15  ;;  %p80_p5 = scmp.lt.s32.totalorder %s74_s15, %s74_s15 }
   0xb   :  { %p81_p6 = por %p80_p5, %p79_p4 }
   0xd   :  { %p82_p7 = pnand %p81_p6, %p75_p3 }
   0xf   :  { %85 = shalt.err (!%p82_p7)
}
  0x10   :  { %17 = dma.hbm_to_vmem [thread:$0]  %s148_s0, 256, %s15_s7, [#allocation3]  }
  0x11   :  { %108 = dma.done.wait [#allocation3], 256  }
  0x12   :  { %109 = vsyncadd [#allocation3], 4294967040  ;;  %v21_v0 = vld [vmem:[#allocation2] sm:$0xff]  ;;  %v22_v1 = vld [vmem:[#allocation2 + $0x8] sm:$0xff]  ;;  %s113_s18 = smov [#allocation5]  }
  0x13   :  { %v23_v2 = vsub.f32 0.0, %v21_v0  ;;  %v24_v3 = vsub.f32 0.0, %v22_v1  ;;  %s45_s19 = sshll.u32 %s113_s18, 4  ;;  %s46_s19 = int_to_ptr.vmem [resolvable:$true] %s45_s19 }
  0x14   :  { %s86_s0 = scalar_lea.vmem %s46_s19, 256  ;;  %p91_p9 = scmp.lt.s32.totalorder %s46_s19, %s46_s19 }
  0x15   :  { %v25_v4 = vmul.f32 1.442695, %v23_v2  ;;  %v27_v5 = vmul.f32 1.442695, %v24_v3  ;;  %p87_p8 = scmp.ne.s32.totalorder %s46_s19, %s86_s0  ;;  %p92_p10 = scmp.lt.s32.totalorder %s86_s0, %s86_s0 }
  0x17   :  { %56 = vpow2.f32 %v25_v4  ;;  %p93_p11 = por %p92_p10, %p91_p9 }
  0x18   :  { %58 = vpow2.f32 %v27_v5 }
  0x19   :  { %p94_p12 = pnand %p93_p11, %p87_p8 }
  0x21   :  { %v57_v6 = vpop.eup %56 }
  0x22   :  { %v59_v7 = vpop.eup %58  ;;  %v29_v8 = vadd.f32 1.0, %v57_v6 }
  0x23   :  { %v30_v9 = vadd.f32 1.0, %v59_v7 }
  0x24   :  { %60 = vrcp.f32 %v29_v8 }
  0x25   :  { %62 = vrcp.f32 %v30_v9 }
  0x2e   :  { %v61_v10 = vpop.eup %60 }
  0x2f   :  { %v63_v11 = vpop.eup %62  ;;  %v35_v12 = vmul.f32 %v61_v10, %v21_v0 }
  0x30   :  { %v36_v13 = vmul.f32 %v63_v11, %v22_v1 }
  0x31   :  { %37 = vst [vmem:[#allocation5] sm:$0xff] %v35_v12 }
  0x32   :  { %38 = vst [vmem:[#allocation5 + $0x8] sm:$0xff] %v36_v13 }
  0x33   :  { %97 = shalt.err (!%p94_p12)
}
  0x34   :  { %s98_s22 = scalar_lea.hbm %s149_s1, 256 }
  0x35   :  { %p99_p13 = scmp.ne.s32.totalorder %s149_s1, %s98_s22  ;;  %p102_p0 = scmp.lt.u32.totalorder %s98_s22, %s149_s1 }
  0x37   :  { %p104_p1 = pnand %p102_p0, %p99_p13 }
  0x39   :  { %107 = shalt.err (!%p104_p1)
}
  0x3a   :  { %48 = dma.vmem_to_hbm [thread:$0]  %s46_s19, 256, %s149_s1, [#allocation4]  }
  0x3b   :  { %110 = dma.done.wait [#allocation4], 256  }
  0x3c   :  { %111 = vsyncadd [#allocation4], 4294967040 }
  0x3d   :  { %52 = vsyncpa [#allocation3], 1 }
  0x3e   :  { %53 = vsyncpa [#allocation4], 1 }

</bundles_post_ra>
